<compile_context>
chip_gen: v5e
topology: v5e:2x2
jax: 0.10.0
libtpu: 0.0.40
codegen_flags: <defaults>
</compile_context>

<pallas_src>
import jax
import jax.numpy as jnp
from jax.experimental import pallas as pl
from jax.experimental.pallas import tpu as pltpu

LANE = 128  # TPU vreg lane width


def ddpm_forward_kernel(a_ref, b_ref, x0_ref, eps_ref, out_ref):
    """One grid step = one (TB, TF) tile of the flattened (N, F) slab.

    a_ref / b_ref are (TB, 1) per-sample scales (broadcast over lanes).
    x0_ref / eps_ref / out_ref are (TB, TF) VMEM tiles.
    """
    out_ref[...] = (a_ref[...] * x0_ref[...]
                    + b_ref[...] * eps_ref[...]).astype(out_ref.dtype)


def _pick_tiles(N, F, block_rows, block_cols):
    # Lane (last-dim) tile: full F if small (allowed even when F % 128 != 0
    # because it equals the full array dim), else a lane-dense multiple of 128.
    if block_cols is None:
        block_cols = F if F <= 2048 else 2048
    tf = block_cols
    # Sublane (row) tile: target ~1024 lane-rows worth of f32 per block
    # (~512 KiB/array). 3 arrays x 2 pipeline buffers stays well inside the
    # default scoped VMEM on v5e (16 MiB) / v6e / v7x (32 MiB).
    if block_rows is None:
        target = max(8, (1024 * LANE) // max(tf, 1))
        if target >= N:
            block_rows = N            # equal-to-full-dim: always legal
        else:
            block_rows = max(8, (target // 8) * 8)  # multiple of 8 sublanes
    tb = block_rows
    return tb, tf


def ddpm_forward(x0, t, alphas_bar, eps=None, *, rng=None,
                 block_rows=None, block_cols=None):
    """DDPM.forward: noise x0 at timesteps t.

    x0:  (N, C, H, W)
    t:   (N,) int
    alphas_bar: (n_steps,) float32 (module buffer)
    eps: (N, C, H, W) or None (generated in the wrapper if None)
    """
    N, C, H, W = x0.shape
    F = C * H * W

    if eps is None:
        # TODO(synk): could generate eps in-kernel via pltpu.prng_seed +
        # pltpu.stateful_normal to save one full HBM pass; kept in the wrapper
        # for parity with torch.randn semantics (caller should pass `rng`).
        key = rng if rng is not None else jax.random.PRNGKey(0)
        eps = jax.random.normal(key, x0.shape, x0.dtype)

    # Free contiguous flatten to a lane-dense 2-D slab; no pad, no slice.
    x2 = x0.reshape(N, F)
    e2 = eps.reshape(N, F)

    # Hoisted per-sample gather (tiny N-element takes, done once).
    ab = alphas_bar.astype(jnp.float32)[t]
    a = jnp.sqrt(ab).reshape(N, 1)
    b = jnp.sqrt(1.0 - ab).reshape(N, 1)

    tb, tf = _pick_tiles(N, F, block_rows, block_cols)

    scale_spec = pl.BlockSpec((tb, 1), lambda i, j: (i, 0))
    data_spec = pl.BlockSpec((tb, tf), lambda i, j: (i, j))

    out2 = pl.pallas_call(
        ddpm_forward_kernel,
        out_shape=jax.ShapeDtypeStruct((N, F), x0.dtype),
        grid=(pl.cdiv(N, tb), pl.cdiv(F, tf)),
        in_specs=[scale_spec, scale_spec, data_spec, data_spec],
        out_specs=data_spec,
        compiler_params=pltpu.CompilerParams(
            # All tiles are independent -> shard across both TCs on v7x.
            dimension_semantics=("parallel", "parallel")),
    )(a, b, x2, e2)

    return out2.reshape(N, C, H, W)


def reference(x0, t, eps, alphas_bar):
    ab = alphas_bar[t].reshape(-1, 1, 1, 1)
    return jnp.sqrt(ab) * x0 + jnp.sqrt(1.0 - ab) * eps


if __name__ == "__main__":
    key = jax.random.PRNGKey(0)
    k_x, k_e, k_x2, k_e2 = jax.random.split(key, 4)

    # Module buffers, same construction as the PyTorch __init__.
    n_steps, min_beta, max_beta = 200, 1e-4, 0.02
    betas = jnp.linspace(min_beta, max_beta, n_steps, dtype=jnp.float32)
    alphas = 1.0 - betas
    alphas_bar = jnp.cumprod(alphas)

    # Case 1: small (N, C, H, W) with F a multiple of 128.
    N, C, H, W = 2, 4, 16, 16
    x0 = jax.random.normal(k_x, (N, C, H, W), dtype=jnp.float32)
    eps = jax.random.normal(k_e, (N, C, H, W), dtype=jnp.float32)
    t = jnp.array([17, 123], dtype=jnp.int32)

    out = jax.block_until_ready(ddpm_forward(x0, t, alphas_bar, eps))
    ref = reference(x0, t, eps, alphas_bar)
    assert out.shape == (N, C, H, W)
    assert jnp.allclose(out, ref, atol=1e-5, rtol=1e-5)

    # Case 2: the module's default img_shape (1, 28, 28) -> F = 784, not a
    # multiple of 128; verifies the no-pad / no-slice ragged path.
    x0b = jax.random.normal(k_x2, (2, 1, 28, 28), dtype=jnp.float32)
    epsb = jax.random.normal(k_e2, (2, 1, 28, 28), dtype=jnp.float32)
    tb_ = jnp.array([0, 199], dtype=jnp.int32)
    outb = jax.block_until_ready(ddpm_forward(x0b, tb_, alphas_bar, epsb))
    refb = reference(x0b, tb_, epsb, alphas_bar)
    assert jnp.allclose(outb, refb, atol=1e-5, rtol=1e-5)

    # TODO(synk): DDPM.backward (self.network(x, t)) is an arbitrary external
    # UNet and is not part of this module's forward pass; not translated.
    print("KERNEL_OK")
</pallas_src>

<mosaic_0001>
module attributes {stable_mosaic.version = 11 : i64} {
  func.func @ddpm_forward_kernel(%arg0: i32, %arg1: i32, %arg2: memref<2x1xf32, #tpu.memory_space<vmem>>, %arg3: memref<2x1xf32, #tpu.memory_space<vmem>>, %arg4: memref<2x1024xf32, #tpu.memory_space<vmem>>, %arg5: memref<2x1024xf32, #tpu.memory_space<vmem>>, %arg6: memref<2x1024xf32, #tpu.memory_space<vmem>>) attributes {dimension_semantics = [#tpu.dimension_semantics<parallel>, #tpu.dimension_semantics<parallel>], iteration_bounds = array<i64: 1, 1>, scalar_prefetch = 0 : i64, scratch_operands = 0 : i64, tpu.core_type = #tpu.core_type<tc>, window_params = [{transform_indices = @transform_0, window_bounds = array<i64: 2, 1>}, {transform_indices = @transform_1, window_bounds = array<i64: 2, 1>}, {transform_indices = @transform_2, window_bounds = array<i64: 2, 1024>}, {transform_indices = @transform_3, window_bounds = array<i64: 2, 1024>}, {transform_indices = @transform_4, window_bounds = array<i64: 2, 1024>}]} {
    %c0 = arith.constant 0 : index
    %c0_0 = arith.constant 0 : index
    %0 = vector.load %arg2[%c0, %c0_0] : memref<2x1xf32, #tpu.memory_space<vmem>>, vector<2x1xf32>
    %c0_1 = arith.constant 0 : index
    %c0_2 = arith.constant 0 : index
    %1 = vector.load %arg4[%c0_1, %c0_2] : memref<2x1024xf32, #tpu.memory_space<vmem>>, vector<2x1024xf32>
    %2 = vector.broadcast %0 : vector<2x1xf32> to vector<2x1024xf32>
    %3 = arith.mulf %2, %1 : vector<2x1024xf32>
    %c0_3 = arith.constant 0 : index
    %c0_4 = arith.constant 0 : index
    %4 = vector.load %arg3[%c0_3, %c0_4] : memref<2x1xf32, #tpu.memory_space<vmem>>, vector<2x1xf32>
    %c0_5 = arith.constant 0 : index
    %c0_6 = arith.constant 0 : index
    %5 = vector.load %arg5[%c0_5, %c0_6] : memref<2x1024xf32, #tpu.memory_space<vmem>>, vector<2x1024xf32>
    %6 = vector.broadcast %4 : vector<2x1xf32> to vector<2x1024xf32>
    %7 = arith.mulf %6, %5 : vector<2x1024xf32>
    %8 = arith.addf %3, %7 : vector<2x1024xf32>
    %c0_7 = arith.constant 0 : index
    %c0_8 = arith.constant 0 : index
    %9 = vector.load %arg6[%c0_7, %c0_8] : memref<2x1024xf32, #tpu.memory_space<vmem>>, vector<2x1024xf32>
    tpu.vector_store %arg6[%c0_7, %c0_8], %8 {strides = array<i32>} : memref<2x1024xf32, #tpu.memory_space<vmem>>, vector<2x1024xf32>,
    return
  }
  func.func @transform_0(%arg0: i32, %arg1: i32) -> (i32, i32) {
    %c0_i32 = arith.constant 0 : i32
    %c0_i32_0 = arith.constant 0 : i32
    return %arg0, %c0_i32 : i32, i32
  }
  func.func @transform_1(%arg0: i32, %arg1: i32) -> (i32, i32) {
    %c0_i32 = arith.constant 0 : i32
    %c0_i32_0 = arith.constant 0 : i32
    return %arg0, %c0_i32 : i32, i32
  }
  func.func @transform_2(%arg0: i32, %arg1: i32) -> (i32, i32) {
    %c0_i32 = arith.constant 0 : i32
    return %arg0, %arg1 : i32, i32
  }
  func.func @transform_3(%arg0: i32, %arg1: i32) -> (i32, i32) {
    %c0_i32 = arith.constant 0 : i32
    return %arg0, %arg1 : i32, i32
  }
  func.func @transform_4(%arg0: i32, %arg1: i32) -> (i32, i32) {
    %c0_i32 = arith.constant 0 : i32
    return %arg0, %arg1 : i32, i32
  }
}

</mosaic_0001>

<bundles_post_ra>
// kernel: tpu_custom_call.1
= control target key start
LH: loop header
LB: loop body
LE: loop exit
PB: predicated region body
PF: predicated region fallthrough
CT: control target
= control target key end

     0   :  { %9 = vsyncpa [#allocation3], 0  ;;  %s306_s0 = inlined_call_operand.vmem [shape: f32[2,1], index: 0, kind: input, shape index: {}]   ;;  %s307_s1 = inlined_call_operand.vmem [shape: f32[2,1], index: 1, kind: input, shape index: {}]   ;;  %s308_s2 = inlined_call_operand.hbm [shape: f32[2,1024], index: 2, kind: input, shape index: {}]   ;;  %s309_s3 = inlined_call_operand.hbm [shape: f32[2,1024], index: 3, kind: input, shape index: {}]   ;;  %s310_s4 = inlined_call_operand.hbm [shape: f32[2,1024], index: 4, kind: output, shape index: {}]  }
   0x1   :  { %10 = vsyncpa [#allocation6], 0 }
   0x2   :  { %11 = vsyncpa [#allocation4], 0  ;;  %s21_s17 = sshll.u32 %s308_s2, 4  ;;  %s256_s18 = smov [#allocation2]   ;;  %s22_s17 = int_to_ptr.hbm [resolvable:$true] %s21_s17 }
   0x3   :  { %s23_s19 = sshll.u32 %s256_s18, 4  ;;  %s32_s22 = sshll.u32 %s309_s3, 4  ;;  %s24_s19 = int_to_ptr.vmem [resolvable:$true] %s23_s19  ;;  %s33_s22 = int_to_ptr.hbm [resolvable:$true] %s32_s22 }
   0x4   :  { %26 = dma.hbm_to_vmem [thread:$0]  %s22_s17, 256, %s24_s19, [#allocation3]  }
   0x5   :  { %s257_s23 = smov [#allocation5]  }
   0x6   :  { %s34_s24 = sshll.u32 %s257_s23, 4  ;;  %s35_s24 = int_to_ptr.vmem [resolvable:$true] %s34_s24 }
   0x7   :  { %37 = dma.hbm_to_vmem [thread:$0]  %s33_s22, 256, %s35_s24, [#allocation6]  }
   0x8   :  { %250 = dma.done.wait [#allocation3], 256  }
   0x9   :  { %251 = vsyncadd [#allocation3], 4294967040 }
   0xa   :  { %252 = dma.done.wait [#allocation6], 256  }
   0xb   :  { %253 = vsyncadd [#allocation6], 4294967040  ;;  %v258_v0 = vmov 0   ;;  %v46_v1 = vld [vmem:[%s306_s0] sm:$0x3]  ;;  %v47_v3 = vld [vmem:[#allocation2] sm:$0xff] }
   0xc   :  { %177 = vset.pattern.permute.xlu0 %v258_v0  ;;  %v83_v2 = vld [vmem:[%s307_s1] sm:$0x3]  ;;  %v48_v4 = vld [vmem:[#allocation2 + $0x8] sm:$0xff]  ;;  %56 = vst [vmem:[#allocation1] ss:$4 sm:$0xff] %v47_v3  ;;  %v84_v13 = vld [vmem:[#allocation5] sm:$0xff] }
   0xd   :  { %51 = vperm.xlu0 %177, %v46_v1   ;;  %58 = vst [vmem:[#allocation1 + $0x20] ss:$4 sm:$0xff] %v48_v4  ;;  %v85_v14 = vld [vmem:[#allocation5 + $0x8] sm:$0xff]  ;;  %vm142_vm0 = vcmask 1041408   ;;  %vm144_vm1 = vcmask 1045508   ;;  %vm146_vm2 = vcmask 1043456  }
   0xe   :  { %s259_s0 = smov [#allocation7]   ;;  %s162_s29 = sshll.u32 %s310_s4, 4  ;;  %s163_s29 = int_to_ptr.hbm [resolvable:$true] %s162_s29 }
   0xf   :  { %s160_s1 = sshll.u32 %s259_s0, 4  ;;  %s161_s1 = int_to_ptr.vmem [resolvable:$true] %s160_s1 }
  0x13   :  { %v59_v5 = vld.sshfl [vmem:[#allocation1] sm:$0xff pattern:$0x73625140]  ;;  %v60_v6 = vld.sshfl [vmem:[#allocation1 + $0x8] sm:$0xff pattern:$0x73625140] }
  0x14   :  { %v61_v7 = vld.sshfl [vmem:[#allocation1 + $0x10] sm:$0xff pattern:$0x73625140]  ;;  %v62_v8 = vld.sshfl [vmem:[#allocation1 + $0x18] sm:$0xff pattern:$0x73625140] }
  0x15   :  { %88 = vperm.xlu0 %177, %v83_v2   ;;  %v63_v9 = vld.sshfl [vmem:[#allocation1 + $0x20] sm:$0xff pattern:$0x73625140]  ;;  %v64_v10 = vld.sshfl [vmem:[#allocation1 + $0x28] sm:$0xff pattern:$0x73625140] }
  0x16   :  { %v65_v11 = vld.sshfl [vmem:[#allocation1 + $0x30] sm:$0xff pattern:$0x73625140]  ;;  %v66_v12 = vld.sshfl [vmem:[#allocation1 + $0x38] sm:$0xff pattern:$0x73625140] }
  0x17   :  { %93 = vst [vmem:[#allocation1] ss:$4 sm:$0xff] %v84_v13 }
  0x18   :  { %95 = vst [vmem:[#allocation1 + $0x20] ss:$4 sm:$0xff] %v85_v14 }
  0x1e   :  { %v97_v16 = vld.sshfl [vmem:[#allocation1 + $0x8] sm:$0xff pattern:$0x73625140]  ;;  %v98_v17 = vld.sshfl [vmem:[#allocation1 + $0x10] sm:$0xff pattern:$0x73625140] }
  0x1f   :  { %v99_v18 = vld.sshfl [vmem:[#allocation1 + $0x18] sm:$0xff pattern:$0x73625140]  ;;  %v101_v19 = vld.sshfl [vmem:[#allocation1 + $0x28] sm:$0xff pattern:$0x73625140] }
  0x20   :  { %v102_v20 = vld.sshfl [vmem:[#allocation1 + $0x30] sm:$0xff pattern:$0x73625140]  ;;  %v103_v21 = vld.sshfl [vmem:[#allocation1 + $0x38] sm:$0xff pattern:$0x73625140] }
  0x21   :  { %v96_v26 = vld.sshfl [vmem:[#allocation1] sm:$0xff pattern:$0x73625140] }
  0x22   :  { %v100_v27 = vld.sshfl [vmem:[#allocation1 + $0x20] sm:$0xff pattern:$0x73625140] }
  0x7f   :  { %v52_v15 = vpop.permute.xlu0 %51 }
  0x80   :  { %v75_v22 = vmul.f32 %v59_v5, %v52_v15  ;;  %v76_v23 = vmul.f32 %v60_v6, %v52_v15  ;;  %v77_v24 = vmul.f32 %v61_v7, %v52_v15  ;;  %v78_v25 = vmul.f32 %v62_v8, %v52_v15 }
  0x81   :  { %v79_v29 = vmul.f32 %v63_v9, %v52_v15  ;;  %v80_v30 = vmul.f32 %v64_v10, %v52_v15  ;;  %v81_v31 = vmul.f32 %v65_v11, %v52_v15  ;;  %v82_v32 = vmul.f32 %v66_v12, %v52_v15 }
  0x87   :  { %v89_v28 = vpop.permute.xlu0 %88 }
  0x88   :  { %v113_v33 = vmul.f32 %v97_v16, %v89_v28  ;;  %v114_v34 = vmul.f32 %v98_v17, %v89_v28  ;;  %v115_v35 = vmul.f32 %v99_v18, %v89_v28  ;;  %v117_v36 = vmul.f32 %v101_v19, %v89_v28 }
  0x89   :  { %v118_v37 = vmul.f32 %v102_v20, %v89_v28  ;;  %v119_v38 = vmul.f32 %v103_v21, %v89_v28  ;;  %v112_v39 = vmul.f32 %v96_v26, %v89_v28  ;;  %v116_v40 = vmul.f32 %v100_v27, %v89_v28 }
  0x8a   :  { %v121_v41 = vadd.f32 %v113_v33, %v76_v23  ;;  %v122_v42 = vadd.f32 %v114_v34, %v77_v24  ;;  %v123_v43 = vadd.f32 %v115_v35, %v78_v25  ;;  %v125_v44 = vadd.f32 %v117_v36, %v80_v30 }
  0x8b   :  { %v120_v45 = vadd.f32 %v112_v39, %v75_v22  ;;  %v124_v46 = vadd.f32 %v116_v40, %v79_v29  ;;  %v126_v47 = vadd.f32 %v118_v37, %v81_v31  ;;  %v127_v48 = vadd.f32 %v119_v38, %v82_v32 }
  0x8c   :  { %v136_v49 = vrot.slane %v121_v41, 6  ;;  %v137_v50 = vrot.slane %v122_v42, 4  ;;  %v138_v51 = vrot.slane %v123_v43, 2  ;;  %v139_v52 = vrot.slane %v125_v44, 6 }
  0x8d   :  { %v140_v53 = vrot.slane %v126_v47, 4  ;;  %v141_v54 = vrot.slane %v127_v48, 2 }
  0x8e   :  { %v143_v55 = vsel %vm142_vm0, %v120_v45, %v136_v49  ;;  %v145_v56 = vsel %vm144_vm1, %v137_v50, %v138_v51  ;;  %v148_v57 = vsel %vm142_vm0, %v124_v46, %v139_v52 }
  0x8f   :  { %v147_v58 = vsel %vm146_vm2, %v143_v55, %v145_v56  ;;  %v149_v59 = vsel %vm144_vm1, %v140_v53, %v141_v54 }
  0x90   :  { %v150_v60 = vsel %vm146_vm2, %v148_v57, %v149_v59  ;;  %153 = vst [vmem:[#allocation7] sm:$0xff] %v147_v58 }
  0x91   :  { %154 = vst [vmem:[#allocation7 + $0x8] sm:$0xff] %v150_v60 }
  0x92   :  { %165 = dma.vmem_to_hbm [thread:$0]  %s161_s1, 256, %s163_s29, [#allocation4]  }
  0x93   :  { %254 = dma.done.wait [#allocation4], 256  }
  0x94   :  { %255 = vsyncadd [#allocation4], 4294967040 }
  0x95   :  { %170 = vsyncpa [#allocation3], 1 }
  0x96   :  { %171 = vsyncpa [#allocation6], 1 }
  0x97   :  { %172 = vsyncpa [#allocation4], 1 }

</bundles_post_ra>
